<compile_context>
chip_gen: v6e
topology: v6e:2x2x1
jax: 0.10.0
libtpu: 0.0.40
codegen_flags: <defaults>
</compile_context>

<pallas_src>
import math

import jax
import jax.numpy as jnp
from jax import lax
from jax.experimental import pallas as pl
from jax.experimental.pallas import tpu as pltpu


def _self_attention_kernel(x_ref, pe_ref, wq_ref, bq_ref, wk_ref, bk_ref,
                           wv_ref, bv_ref, attn_ref, out_ref):
    # x_ref : (1, D, S) one batch element, already laid out as (d_model, seq)
    # pe_ref: (D, S)    transposed positional-encoding table (shared across grid steps)
    # w*_ref: (S, S)    Linear weights, pre-transposed to (in, out)
    # b*_ref: (1, S)    Linear biases
    # attn_ref: (1, D, D)  softmax(q k^T / sqrt(S))
    # out_ref : (1, D, S)  attn @ v
    seq = x_ref.shape[-1]                      # static Python int

    xt = x_ref[0] + pe_ref[...]                # (D, S)  pos-encoding add fused in-kernel

    q = jnp.dot(xt, wq_ref[...], preferred_element_type=jnp.float32) + bq_ref[...]
    k = jnp.dot(xt, wk_ref[...], preferred_element_type=jnp.float32) + bk_ref[...]
    v = jnp.dot(xt, wv_ref[...], preferred_element_type=jnp.float32) + bv_ref[...]

    # scores = q @ k^T / sqrt(input_size)   (contract last dims -> MXU trans_b matmul)
    s = lax.dot_general(q, k, (((1,), (1,)), ((), ())),
                        preferred_element_type=jnp.float32)
    s = s * (1.0 / math.sqrt(float(seq)))

    # numerically-stable softmax over the last axis
    m = jnp.max(s, axis=-1, keepdims=True)
    p = jnp.exp(s - m)
    attn = p / jnp.sum(p, axis=-1, keepdims=True)

    attn_ref[0] = attn
    out_ref[0] = jnp.dot(attn, v, preferred_element_type=jnp.float32)


def _positional_encoding_table(seq_length, d_model):
    """Standard sinusoidal table, shape (seq_length, d_model). Computed once, outside the kernel."""
    pos = jnp.arange(seq_length, dtype=jnp.float32)[:, None]
    i = jnp.arange(d_model)[None, :]
    angle_rates = 1.0 / jnp.power(
        10000.0, (2 * (i // 2)).astype(jnp.float32) / float(d_model))
    pe = pos * angle_rates
    even = (jnp.arange(d_model) % 2) == 0
    return jnp.where(even[None, :], jnp.sin(pe), jnp.cos(pe))


def self_attention(x, wq, bq, wk, bk, wv, bv):
    """x: (B, seq_length, d_model).  w*: (seq, seq) PyTorch Linear weights (out, in).  b*: (seq,)."""
    x = x.astype(jnp.float32)
    B, S, D = x.shape
    assert wq.shape == (S, S) and bq.shape == (S,), "Linear feature dim must equal seq_length"

    # Precompute the pos-encoding table once (no per-grid-step pow/sin/cos inside the kernel).
    pe_t = _positional_encoding_table(S, D).T              # (D, S)

    # Layout glue: the Linears act on the seq axis, so present x as (B, D, S) with the
    # 128-wide seq axis on lanes. The pe add itself stays fused inside the kernel.
    x_t = jnp.swapaxes(x, 1, 2)                            # (B, D, S)

    wq_t, wk_t, wv_t = wq.T, wk.T, wv.T                    # (in, out)
    bq2, bk2, bv2 = bq[None, :], bk[None, :], bv[None, :]  # (1, S)

    const2 = lambda b: (0, 0)
    out_shape = (jax.ShapeDtypeStruct((B, D, D), jnp.float32),   # attention_weights
                 jax.ShapeDtypeStruct((B, D, S), jnp.float32))   # attended_values

    attn, attended = pl.pallas_call(
        _self_attention_kernel,
        out_shape=out_shape,
        grid_spec=pltpu.PrefetchScalarGridSpec(
            num_scalar_prefetch=0,
            grid=(B,),
            in_specs=[
                pl.BlockSpec((1, D, S), lambda b: (b, 0, 0)),   # x_t (per batch element)
                pl.BlockSpec((D, S), const2),                   # pe_t (shared)
                pl.BlockSpec((S, S), const2),                   # Wq^T
                pl.BlockSpec((1, S), const2),                   # bq
                pl.BlockSpec((S, S), const2),                   # Wk^T
                pl.BlockSpec((1, S), const2),                   # bk
                pl.BlockSpec((S, S), const2),                   # Wv^T
                pl.BlockSpec((1, S), const2),                   # bv
            ],
            out_specs=[
                pl.BlockSpec((1, D, D), lambda b: (b, 0, 0)),   # attention_weights
                pl.BlockSpec((1, D, S), lambda b: (b, 0, 0)),   # attended_values
            ],
        ),
        compiler_params=pltpu.CompilerParams(
            dimension_semantics=("parallel",),   # lets v7x shard the batch loop over its 2 TCs
            vmem_limit_bytes=64 << 20,           # headroom on v5e's 16 MiB scoped default
        ),
    )(x_t, pe_t, wq_t, bq2, wk_t, bk2, wv_t, bv2)
    return attn, attended


def _reference(x, wq, bq, wk, bk, wv, bv):
    """Pure-JAX reference mirroring the PyTorch forward."""
    B, S, D = x.shape
    pe = _positional_encoding_table(S, D)
    xp = x + pe[None]
    xt = jnp.swapaxes(xp, 1, 2)                            # (B, D, S)
    q = xt @ wq.T + bq
    k = xt @ wk.T + bk
    v = xt @ wv.T + bv
    scores = jnp.einsum('bds,bes->bde', q, k) / math.sqrt(float(S))
    attn = jax.nn.softmax(scores, axis=-1)
    attended = jnp.einsum('bde,bes->bds', attn, v)
    return attn, attended


if __name__ == "__main__":
    key = jax.random.PRNGKey(0)
    kx, kq, kbq, kk, kbk, kv, kbv = jax.random.split(key, 7)

    B = 2      # batch
    S = 128    # seq_length == input_size (feature dim seen by the Linear layers after transpose)
    D = 64     # d_model (per-timestep feature dim of x)

    bound = 1.0 / math.sqrt(S)   # nn.Linear default init range
    x = jax.random.normal(kx, (B, S, D), dtype=jnp.float32)
    wq = jax.random.uniform(kq, (S, S), jnp.float32, -bound, bound)
    bq = jax.random.uniform(kbq, (S,), jnp.float32, -bound, bound)
    wk = jax.random.uniform(kk, (S, S), jnp.float32, -bound, bound)
    bk = jax.random.uniform(kbk, (S,), jnp.float32, -bound, bound)
    wv = jax.random.uniform(kv, (S, S), jnp.float32, -bound, bound)
    bv = jax.random.uniform(kbv, (S,), jnp.float32, -bound, bound)

    attn, attended = self_attention(x, wq, bq, wk, bk, wv, bv)
    attn, attended = jax.block_until_ready((attn, attended))

    ref_attn, ref_attended = _reference(x, wq, bq, wk, bk, wv, bv)
    assert attn.shape == (B, D, D) and attended.shape == (B, D, S)
    assert jnp.allclose(attn.sum(-1), 1.0, atol=1e-3), "softmax rows must sum to 1"
    assert jnp.allclose(attn, ref_attn, atol=1e-2, rtol=1e-2), "attention_weights mismatch"
    assert jnp.allclose(attended, ref_attended, atol=1e-2, rtol=1e-2), "attended_values mismatch"

    print("KERNEL_OK")
</pallas_src>

<mosaic_0001>
module attributes {stable_mosaic.version = 11 : i64} {
  func.func @_self_attention_kernel(%arg0: i32, %arg1: memref<1x64x128xf32, #tpu.memory_space<vmem>>, %arg2: memref<64x128xf32, #tpu.memory_space<vmem>>, %arg3: memref<128x128xf32, #tpu.memory_space<vmem>>, %arg4: memref<1x128xf32, #tpu.memory_space<vmem>>, %arg5: memref<128x128xf32, #tpu.memory_space<vmem>>, %arg6: memref<1x128xf32, #tpu.memory_space<vmem>>, %arg7: memref<128x128xf32, #tpu.memory_space<vmem>>, %arg8: memref<1x128xf32, #tpu.memory_space<vmem>>, %arg9: memref<1x64x64xf32, #tpu.memory_space<vmem>>, %arg10: memref<1x64x128xf32, #tpu.memory_space<vmem>>) attributes {dimension_semantics = [#tpu.dimension_semantics<parallel>], iteration_bounds = array<i64: 2>, scalar_prefetch = 0 : i64, scratch_operands = 0 : i64, tpu.core_type = #tpu.core_type<tc>, window_params = [{transform_indices = @transform_0, window_bounds = array<i64: 1, 64, 128>}, {pipeline_mode = #tpu.pipeline_mode<synchronous>, transform_indices = @transform_1, window_bounds = array<i64: 64, 128>}, {pipeline_mode = #tpu.pipeline_mode<synchronous>, transform_indices = @transform_2, window_bounds = array<i64: 128, 128>}, {pipeline_mode = #tpu.pipeline_mode<synchronous>, transform_indices = @transform_3, window_bounds = array<i64: 1, 128>}, {pipeline_mode = #tpu.pipeline_mode<synchronous>, transform_indices = @transform_4, window_bounds = array<i64: 128, 128>}, {pipeline_mode = #tpu.pipeline_mode<synchronous>, transform_indices = @transform_5, window_bounds = array<i64: 1, 128>}, {pipeline_mode = #tpu.pipeline_mode<synchronous>, transform_indices = @transform_6, window_bounds = array<i64: 128, 128>}, {pipeline_mode = #tpu.pipeline_mode<synchronous>, transform_indices = @transform_7, window_bounds = array<i64: 1, 128>}, {transform_indices = @transform_8, window_bounds = array<i64: 1, 64, 64>}, {transform_indices = @transform_9, window_bounds = array<i64: 1, 64, 128>}]} {
    %c0 = arith.constant 0 : index
    %c0_0 = arith.constant 0 : index
    %c0_1 = arith.constant 0 : index
    %0 = vector.load %arg1[%c0, %c0_0, %c0_1] : memref<1x64x128xf32, #tpu.memory_space<vmem>>, vector<1x64x128xf32>
    %1 = vector.shape_cast %0 : vector<1x64x128xf32> to vector<64x128xf32>
    %c0_2 = arith.constant 0 : index
    %c0_3 = arith.constant 0 : index
    %2 = vector.load %arg2[%c0_2, %c0_3] : memref<64x128xf32, #tpu.memory_space<vmem>>, vector<64x128xf32>
    %3 = arith.addf %1, %2 : vector<64x128xf32>
    %c0_4 = arith.constant 0 : index
    %c0_5 = arith.constant 0 : index
    %4 = vector.load %arg3[%c0_4, %c0_5] : memref<128x128xf32, #tpu.memory_space<vmem>>, vector<128x128xf32>
    %cst = arith.constant dense<0.000000e+00> : vector<64x128xf32>
    %5 = tpu.matmul %3, %4, %cst {dimension_numbers = #tpu.dot_dimension_numbers<[1], [0], [0], [1], [0, 0, 1, 1], [], []>} : vector<64x128xf32>, vector<128x128xf32>, vector<64x128xf32> -> vector<64x128xf32>
    %c0_6 = arith.constant 0 : index
    %c0_7 = arith.constant 0 : index
    %6 = vector.load %arg4[%c0_6, %c0_7] : memref<1x128xf32, #tpu.memory_space<vmem>>, vector<1x128xf32>
    %7 = vector.broadcast %6 : vector<1x128xf32> to vector<64x128xf32>
    %8 = arith.addf %5, %7 : vector<64x128xf32>
    %c0_8 = arith.constant 0 : index
    %c0_9 = arith.constant 0 : index
    %9 = vector.load %arg5[%c0_8, %c0_9] : memref<128x128xf32, #tpu.memory_space<vmem>>, vector<128x128xf32>
    %cst_10 = arith.constant dense<0.000000e+00> : vector<64x128xf32>
    %10 = tpu.matmul %3, %9, %cst_10 {dimension_numbers = #tpu.dot_dimension_numbers<[1], [0], [0], [1], [0, 0, 1, 1], [], []>} : vector<64x128xf32>, vector<128x128xf32>, vector<64x128xf32> -> vector<64x128xf32>
    %c0_11 = arith.constant 0 : index
    %c0_12 = arith.constant 0 : index
    %11 = vector.load %arg6[%c0_11, %c0_12] : memref<1x128xf32, #tpu.memory_space<vmem>>, vector<1x128xf32>
    %12 = vector.broadcast %11 : vector<1x128xf32> to vector<64x128xf32>
    %13 = arith.addf %10, %12 : vector<64x128xf32>
    %c0_13 = arith.constant 0 : index
    %c0_14 = arith.constant 0 : index
    %14 = vector.load %arg7[%c0_13, %c0_14] : memref<128x128xf32, #tpu.memory_space<vmem>>, vector<128x128xf32>
    %cst_15 = arith.constant dense<0.000000e+00> : vector<64x128xf32>
    %15 = tpu.matmul %3, %14, %cst_15 {dimension_numbers = #tpu.dot_dimension_numbers<[1], [0], [0], [1], [0, 0, 1, 1], [], []>} : vector<64x128xf32>, vector<128x128xf32>, vector<64x128xf32> -> vector<64x128xf32>
    %c0_16 = arith.constant 0 : index
    %c0_17 = arith.constant 0 : index
    %16 = vector.load %arg8[%c0_16, %c0_17] : memref<1x128xf32, #tpu.memory_space<vmem>>, vector<1x128xf32>
    %17 = vector.broadcast %16 : vector<1x128xf32> to vector<64x128xf32>
    %18 = arith.addf %15, %17 : vector<64x128xf32>
    %cst_18 = arith.constant dense<0.000000e+00> : vector<64x64xf32>
    %19 = tpu.matmul %8, %13, %cst_18 {dimension_numbers = #tpu.dot_dimension_numbers<[1], [1], [0], [0], [0, 0, 1, 0], [], []>} : vector<64x128xf32>, vector<64x128xf32>, vector<64x64xf32> -> vector<64x64xf32>
    %cst_19 = arith.constant 0.0883883461 : f32
    %20 = vector.broadcast %cst_19 : f32 to vector<64x64xf32>
    %21 = arith.mulf %19, %20 : vector<64x64xf32>
    %cst_20 = arith.constant dense<0xFF800000> : vector<64xf32>
    %22 = vector.multi_reduction <maximumf>, %21, %cst_20 [1] : vector<64x64xf32> to vector<64xf32>
    %23 = vector.shape_cast %22 : vector<64xf32> to vector<64x1xf32>
    %24 = vector.broadcast %23 : vector<64x1xf32> to vector<64x64xf32>
    %25 = arith.subf %21, %24 : vector<64x64xf32>
    %26 = math.exp %25 : vector<64x64xf32>
    %cst_21 = arith.constant dense<0.000000e+00> : vector<64xf32>
    %27 = vector.multi_reduction <add>, %26, %cst_21 [1] : vector<64x64xf32> to vector<64xf32>
    %28 = vector.shape_cast %27 : vector<64xf32> to vector<64x1xf32>
    %29 = vector.broadcast %28 : vector<64x1xf32> to vector<64x64xf32>
    %30 = arith.divf %26, %29 : vector<64x64xf32>
    %c0_22 = arith.constant 0 : index
    %c0_23 = arith.constant 0 : index
    %c0_24 = arith.constant 0 : index
    %31 = vector.load %arg9[%c0_22, %c0_23, %c0_24] : memref<1x64x64xf32, #tpu.memory_space<vmem>>, vector<1x64x64xf32>
    %32 = vector.shape_cast %31 : vector<1x64x64xf32> to vector<64x64xf32>
    %33 = vector.shape_cast %30 : vector<64x64xf32> to vector<1x64x64xf32>
    tpu.vector_store %arg9[%c0_22, %c0_23, %c0_24], %33 {strides = array<i32>} : memref<1x64x64xf32, #tpu.memory_space<vmem>>, vector<1x64x64xf32>,
    %cst_25 = arith.constant dense<0.000000e+00> : vector<64x128xf32>
    %34 = tpu.matmul %30, %18, %cst_25 {dimension_numbers = #tpu.dot_dimension_numbers<[1], [0], [0], [1], [0, 0, 1, 1], [], []>} : vector<64x64xf32>, vector<64x128xf32>, vector<64x128xf32> -> vector<64x128xf32>
    %c0_26 = arith.constant 0 : index
    %c0_27 = arith.constant 0 : index
    %c0_28 = arith.constant 0 : index
    %35 = vector.load %arg10[%c0_26, %c0_27, %c0_28] : memref<1x64x128xf32, #tpu.memory_space<vmem>>, vector<1x64x128xf32>
    %36 = vector.shape_cast %35 : vector<1x64x128xf32> to vector<64x128xf32>
    %37 = vector.shape_cast %34 : vector<64x128xf32> to vector<1x64x128xf32>
    tpu.vector_store %arg10[%c0_26, %c0_27, %c0_28], %37 {strides = array<i32>} : memref<1x64x128xf32, #tpu.memory_space<vmem>>, vector<1x64x128xf32>,
    return
  }
  func.func @transform_0(%arg0: i32) -> (i32, i32, i32) {
    %c0_i32 = arith.constant 0 : i32
    %c0_i32_0 = arith.constant 0 : i32
    %c0_i32_1 = arith.constant 0 : i32
    return %arg0, %c0_i32, %c0_i32_0 : i32, i32, i32
  }
  func.func @transform_1(%arg0: i32) -> (i32, i32) {
    %c0_i32 = arith.constant 0 : i32
    %c0_i32_0 = arith.constant 0 : i32
    %c0_i32_1 = arith.constant 0 : i32
    return %c0_i32, %c0_i32_0 : i32, i32
  }
  func.func @transform_2(%arg0: i32) -> (i32, i32) {
    %c0_i32 = arith.constant 0 : i32
    %c0_i32_0 = arith.constant 0 : i32
    %c0_i32_1 = arith.constant 0 : i32
    return %c0_i32, %c0_i32_0 : i32, i32
  }
  func.func @transform_3(%arg0: i32) -> (i32, i32) {
    %c0_i32 = arith.constant 0 : i32
    %c0_i32_0 = arith.constant 0 : i32
    %c0_i32_1 = arith.constant 0 : i32
    return %c0_i32, %c0_i32_0 : i32, i32
  }
  func.func @transform_4(%arg0: i32) -> (i32, i32) {
    %c0_i32 = arith.constant 0 : i32
    %c0_i32_0 = arith.constant 0 : i32
    %c0_i32_1 = arith.constant 0 : i32
    return %c0_i32, %c0_i32_0 : i32, i32
  }
  func.func @transform_5(%arg0: i32) -> (i32, i32) {
    %c0_i32 = arith.constant 0 : i32
    %c0_i32_0 = arith.constant 0 : i32
    %c0_i32_1 = arith.constant 0 : i32
    return %c0_i32, %c0_i32_0 : i32, i32
  }
  func.func @transform_6(%arg0: i32) -> (i32, i32) {
    %c0_i32 = arith.constant 0 : i32
    %c0_i32_0 = arith.constant 0 : i32
    %c0_i32_1 = arith.constant 0 : i32
    return %c0_i32, %c0_i32_0 : i32, i32
  }
  func.func @transform_7(%arg0: i32) -> (i32, i32) {
    %c0_i32 = arith.constant 0 : i32
    %c0_i32_0 = arith.constant 0 : i32
    %c0_i32_1 = arith.constant 0 : i32
    return %c0_i32, %c0_i32_0 : i32, i32
  }
  func.func @transform_8(%arg0: i32) -> (i32, i32, i32) {
    %c0_i32 = arith.constant 0 : i32
    %c0_i32_0 = arith.constant 0 : i32
    %c0_i32_1 = arith.constant 0 : i32
    return %arg0, %c0_i32, %c0_i32_0 : i32, i32, i32
  }
  func.func @transform_9(%arg0: i32) -> (i32, i32, i32) {
    %c0_i32 = arith.constant 0 : i32
    %c0_i32_0 = arith.constant 0 : i32
    %c0_i32_1 = arith.constant 0 : i32
    return %arg0, %c0_i32, %c0_i32_0 : i32, i32, i32
  }
}

</mosaic_0001>

<bundles_post_ra>
// kernel: tpu_custom_call.1
= control target key start
LH: loop header
LB: loop body
LE: loop exit
PB: predicated region body
PF: predicated region fallthrough
CT: control target
= control target key end

     0   :  { %s2526_s0 = inlined_call_operand.hbm [shape: f32[2,64,128], index: 0, kind: input, shape index: {}]   ;;  %s2527_s1 = inlined_call_operand.hbm [shape: f32[64,128], index: 1, kind: input, shape index: {}]   ;;  %s2528_s2 = inlined_call_operand.hbm [shape: f32[128,128], index: 2, kind: input, shape index: {}]   ;;  %s2529_s3 = inlined_call_operand.vmem [shape: f32[1,128], index: 3, kind: input, shape index: {}]   ;;  %s2530_s4 = inlined_call_operand.hbm [shape: f32[128,128], index: 4, kind: input, shape index: {}]   ;;  %s2531_s5 = inlined_call_operand.vmem [shape: f32[1,128], index: 5, kind: input, shape index: {}]   ;;  %s2532_s6 = inlined_call_operand.hbm [shape: f32[128,128], index: 6, kind: input, shape index: {}]   ;;  %s2533_s7 = inlined_call_operand.vmem [shape: f32[1,128], index: 7, kind: input, shape index: {}]   ;;  %s2534_s8 = inlined_call_operand.hbm [shape: f32[2,64,64], index: 8, kind: output, shape index: {0}]   ;;  %s2535_s9 = inlined_call_operand.hbm [shape: f32[2,64,128], index: 9, kind: output, shape index: {1}]  }
   0x1   :  { %2542 = sst [smem:[#allocation19_spill]] %s2527_s1 }
   0x2   :  { %2543 = sst [smem:[#allocation20_spill]] %s2528_s2 }
   0x3   :  { %2544 = sst [smem:[#allocation21_spill]] %s2530_s4 }
   0x4   :  { %15 = vsyncpa [#allocation3], 0 }
   0x5   :  { %17 = vsyncpa [#allocation3 + $0x1], 0 }
   0x6   :  { %18 = vsyncpa [#allocation6], 0 }
   0x7   :  { %19 = vsyncpa [#allocation9], 0 }
   0x8   :  { %20 = vsyncpa [#allocation4], 0 }
   0x9   :  { %22 = vsyncpa [#allocation4 + $0x1], 0 }
   0xa   :  { %23 = vsyncpa [#allocation13], 0 }
   0xb   :  { %25 = vsyncpa [#allocation13 + $0x1], 0  ;;  %s2126_s30 = smov 0   ;;  %s2128_s10 = smov 0  }
   0xc   :  { %s2130_s11 = smov 0   ;;  %s2132_s12 = smov 0  }
   0xd LB: > { %s2147_s13 = sadd.s32 4294967295, %s2063_s12   ;;  %s1353_s14 = sadd.s32 4294967294, %s2063_s12   ;;  %s2063_s12 = sphi %s2132_s12, %s2568_s12   ;;  %s2059_s11 = sphi %s2130_s11, %s2567_s11   ;;  %s2055_s10 = sphi %s2128_s10, %s2566_s10   ;;  %s2051_s30 = sphi %s2126_s30, %s2565_s30  }
   0xe   : > { %p51_p0 = scmp.ne.s32.totalorder %s2055_s10, %s2051_s30  ;;  %p2536_p1 = scmp.eq.s32.totalorder %s2147_s13, 0 }
   0xf   : > { %p222_p2 = scmp.eq.s32.totalorder %s2147_s13, 1  ;;  %p228_p3 = scmp.eq.s32.totalorder %s1353_s14, 1 }
  0x10   : > { %p2156_p4 = por %p2536_p1, %p51_p0  ;;  %p1354_p5 = scmp.ge.s32.totalorder %s2063_s12, 1 }
  0x11   : > { %p2161_p6 = por %p228_p3, %p51_p0  ;;  %p261_p7 = scmp.lt.s32.totalorder %s2063_s12, 3 }
  0x12   : > { %s2545_s15 = scalar_select %p2156_p4, 1, 0 }
  0x13   : > { %s2546_s16 = scalar_select %p2161_p6, 1, 0 }
  0x14   : > { %p2166_p8 = pnand %p1354_p5, %p261_p7  ;;  %s2065_s18 = smov [#allocation5]  }
  0x15   : > { %s273_s19 = sshll.u32 %s2065_s18, 4  ;;  %s2066_s21 = smov [#allocation8]   ;;  %s274_s19 = int_to_ptr.vmem [resolvable:$true] %s273_s19 }
  0x16   : > { %s2547_s17 = scalar_select %p2166_p8, 1, 0 }
  0x17   : > { %p1723_p9 = pneg %p2166_p8  ;;  %s302_s22 = sshll.u32 %s2066_s21, 4  ;;  %s303_s22 = int_to_ptr.vmem [resolvable:$true] %s302_s22 }
  0x18   : > { %s2067_s23 = smov [#allocation7]   ;;  %s1840_s25 = scalar_lea.vmem %s274_s19, 1024 }
  0x19   : > { %p2175_p11 = pnand %p1723_p9, %p2536_p1  ;;  %s286_s24 = sshll.u32 %s2067_s23, 4  ;;  %s287_s24 = int_to_ptr.vmem [resolvable:$true] %s286_s24 }
  0x1a   : > { %p1841_p13 = scmp.ne.s32.totalorder %s274_s19, %s1840_s25  ;;  %p1848_p5 = scmp.lt.s32.totalorder %s274_s19, %s274_s19 }
  0x1b   : > { %p1831_p12 = pneg %p2175_p11  ;;  %p1849_p7 = scmp.lt.s32.totalorder %s1840_s25, %s1840_s25 }
  0x1d   : > { %p1843_p0 = pnand %p1841_p13, %p1831_p12  ;;  %p1850_p9 = por %p1849_p7, %p1848_p5 }
  0x1f   : > { %p1844_p3 = pneg %p1843_p0 }
  0x21   : > { %p1851_p10 = pnand %p1850_p9, %p1844_p3 }
  0x23   : > { %1854 = shalt.err (!%p1851_p10)
}
  0x24   : > { %s2537_s26 = smov 128   ;;  %s2538_s27 = smov 8  }
  0x25   : > { %s2549_s1 = sld [smem:[#allocation19_spill]]  ;;  %s1866_s14 = scalar_lea.vmem %s303_s22, 2048 }
  0x26   : > { %p1867_p13 = scmp.ne.s32.totalorder %s303_s22, %s1866_s14  ;;  %p1874_p3 = scmp.lt.s32.totalorder %s303_s22, %s303_s22 }
  0x27   : > { %p1875_p10 = scmp.lt.s32.totalorder %s1866_s14, %s1866_s14 }
  0x28   : > { %p1869_p0 = pnand %p1867_p13, %p1831_p12 }
  0x29   : > { %p1876_p7 = por %p1875_p10, %p1874_p3 }
  0x2a   : > { %p1870_p5 = pneg %p1869_p0 }
  0x2b   : > { %1726 = dma.hbm_to_vmem [thread:$0]  (!%p2175_p11), %s2549_s1, 1024, %s274_s19, [#allocation6], %s2537_s26, %s2537_s26, %s2538_s27  }
  0x2c   : > { %p1877_p9 = pnand %p1876_p7, %p1870_p5 }
  0x2e   : > { %1880 = shalt.err (!%p1877_p9)
}
  0x2f   : > { %s2550_s4 = sld [smem:[#allocation21_spill]]  ;;  %s1892_s19 = scalar_lea.vmem %s287_s24, 2048 }
  0x30   : > { %p1893_p1 = scmp.ne.s32.totalorder %s287_s24, %s1892_s19  ;;  %p1900_p3 = scmp.lt.s32.totalorder %s287_s24, %s287_s24 }
  0x31   : > { %p1901_p5 = scmp.lt.s32.totalorder %s1892_s19, %s1892_s19 }
  0x32   : > { %p1895_p13 = pnand %p1893_p1, %p1831_p12 }
  0x33   : > { %p1902_p10 = por %p1901_p5, %p1900_p3 }
  0x34   : > { %p1896_p0 = pneg %p1895_p13 }
  0x35   : > { %1732 = dma.hbm_to_vmem [thread:$0]  (!%p2175_p11), %s2550_s4, 2048, %s303_s22, [#allocation9], %s2537_s26, %s2537_s26, %s2538_s27  }
  0x36   : > { %p1903_p7 = pnand %p1902_p10, %p1896_p0 }
  0x38   : > { %1906 = shalt.err (!%p1903_p7)
}
  0x39   : > { %s2551_s2 = sld [smem:[#allocation20_spill]]  ;;  %s2070_s22 = smov [#allocation10]  }
  0x3a   : > { %s318_s28 = sshll.u32 %s2070_s22, 4  ;;  %s319_s28 = int_to_ptr.vmem [resolvable:$true] %s318_s28 }
  0x3b   : > { %s1918_s29 = scalar_lea.vmem %s319_s28, 2048  ;;  %p1926_p0 = scmp.lt.s32.totalorder %s319_s28, %s319_s28 }
  0x3c   : > { %p1919_p1 = scmp.ne.s32.totalorder %s319_s28, %s1918_s29  ;;  %p1927_p3 = scmp.lt.s32.totalorder %s1918_s29, %s1918_s29 }
  0x3e   : > { %p1921_p9 = pnand %p1919_p1, %p1831_p12  ;;  %p1928_p5 = por %p1927_p3, %p1926_p0 }
  0x3f   : > { %1729 = dma.hbm_to_vmem [thread:$0]  (!%p2175_p11), %s2551_s2, 2048, %s287_s24, [#allocation6], %s2537_s26, %s2537_s26, %s2538_s27  }
  0x40   : > { %p1922_p13 = pneg %p1921_p9 }
  0x42   : > { %p1929_p10 = pnand %p1928_p5, %p1922_p13 }
  0x44   : > { %1932 = shalt.err (!%p1929_p10)
}
  0x45   : > { %1735 = dma.hbm_to_vmem [thread:$0]  (!%p2175_p11), %s2532_s6, 2048, %s319_s28, [#allocation9], %s2537_s26, %s2537_s26, %s2538_s27  }
  0x46   : > { %s2226_s18 = sadd.s32 1, %s2063_s12   ;;  %s38_s20 = sadd.s32 1, %s2059_s11 }
  0x47   : > { %s35_s21 = ssub.s32 %s2063_s12, %s2226_s18  ;;  %p45_p12 = scmp.ne.s32.totalorder %s2059_s11, %s2055_s10 }
  0x48   : > { %p36_p7 = scmp.eq.s32.totalorder %s35_s21, 0  ;;  %p46_p1 = scmp.eq.s32.totalorder %s2063_s12, 0 }
  0x49   : > { %p2236_p9 = por %p222_p2, %p45_p12  ;;  %p1751_p13 = scmp.lt.s32.totalorder %s2063_s12, 2 }
  0x4a   : > { %s2242_s23 = scalar_select %p36_p7, %s2059_s11, %s38_s20  }
  0x4b   : > { %s2552_s19 = scalar_select %p2236_p9, 1, 0 }
  0x4c   : > { %p47_p0 = por %p46_p1, %p45_p12  ;;  %s335_s25 = sand.u32 1, %s2059_s11  }
  0x4d   : > { %s1360_s22 = sshll.u32 %s335_s25, 6  ;;  %s1390_s28 = sshll.u32 %s2063_s12, 10 }
  0x4e   : > { %s2249_s14 = scalar_lea.hbm %s2526_s0, %s1390_s28  ;;  %s339_s21 = scalar_lea.vmem [#allocation2], %s1360_s22 }
  0x4f   : > { %s346_s26 = sshll.u32 %s339_s21, 4  ;;  %p2253_p2 = pnand %p1751_p13, %p47_p0  ;;  %s2251_s26 = int_to_ptr.vmem [resolvable:$true] %s346_s26 }
  0x50   : > { %s2257_s20 = scalar_lea.sflag [#allocation3], %s335_s25  ;;  %s1933_s1 = scalar_lea.hbm %s2249_s14, 1024 }
  0x51   : > { %p1934_p11 = scmp.ne.s32.totalorder %s2249_s14, %s1933_s1  ;;  %p1935_p3 = pneg %p2253_p2 }
  0x52   : > { %s1938_s22 = scalar_lea.hbm %s2526_s0, 2048  ;;  %p1939_p12 = scmp.lt.s32.totalorder %s2249_s14, %s2526_s0 }
  0x53   : > { %p1936_p5 = pnand %p1935_p3, %p1934_p11  ;;  %p1940_p7 = scmp.lt.s32.totalorder %s1938_s22, %s1933_s1 }
  0x55   : > { %p1937_p10 = pneg %p1936_p5  ;;  %p1941_p1 = por %p1940_p7, %p1939_p12 }
  0x57   : > { %p1942_p13 = pnand %p1941_p1, %p1937_p10 }
  0x59   : > { %1945 = shalt.err (!%p1942_p13)
}
  0x5a   : > { %s1946_s25 = scalar_lea.vmem %s2251_s26, 1024  ;;  %s2071_s2 = smov [#allocation2]  }
  0x5b   : > { %p1947_p0 = scmp.ne.s32.totalorder %s2251_s26, %s1946_s25  ;;  %s1951_s4 = sshll.u32 %s2071_s2, 4  ;;  %s1952_s4 = int_to_ptr.vmem [resolvable:$false] %s1951_s4 }
  0x5c   : > { %s1953_s28 = scalar_lea.vmem %s1952_s4, 2048  ;;  %p1954_p5 = scmp.lt.s32.totalorder %s2251_s26, %s1952_s4 }
  0x5d   : > { %p1949_p6 = pnand %p1947_p0, %p1935_p3  ;;  %p1955_p9 = scmp.lt.s32.totalorder %s1953_s28, %s1946_s25 }
  0x5f   : > { %p1950_p11 = pneg %p1949_p6  ;;  %p1956_p4 = por %p1955_p9, %p1954_p5 }
  0x61   : > { %p1957_p8 = pnand %p1956_p4, %p1950_p11 }
  0x63   : > { %1960 = shalt.err (!%p1957_p8)
}
  0x64   : > { %s2554_s1 = smov 8   ;;  %s2555_s29 = smov 128  }
  0x65   : > { %1739 = dma.hbm_to_vmem [thread:$0]  (!%p2253_p2), %s2249_s14, 1024, %s2251_s26, %s2257_s20, %s2555_s29, %s2555_s29, %s2554_s1  }
  0x66   : > { %p2556_p6 = scmp.ne.s32.totalorder %s2547_s17, 0 }
  0x67   : > { %s2284_s2 = sand.u32 (!%p2556_p6), 1, %s2055_s10   ;;  %p2557_p4 = scmp.ne.s32.totalorder (!%p2556_p6), %s2545_s15, 0 }
  0x68   : > { %358 = sbr.rel (%p2556_p6) target bundleno = 1123 (0x463), region = 52  ;;  %s2287_s4 = sshll.u32 (!%p2556_p6), %s2284_s2, 6 }
  0x69   : > { %s361_s27 = scalar_lea.sflag (!%p2556_p6), [#allocation3], %s2284_s2  ;;  %s2291_s22 = scalar_lea.vmem (!%p2556_p6), [#allocation2], %s2287_s4 }
  0x6d   : > { %2030 = dma.done.wait (%p2557_p4), %s361_s27, 1024  }
  0x6e   : > { %2032 = vsyncadd (%p2557_p4), %s361_s27, 4294966272  ;;  %p2558_p8 = scmp.eq.s32.totalorder %s2147_s13, 0 }
  0x70   : > { %2034 = dma.done.wait (%p2558_p8), [#allocation6], 3072   ;;  %p2559_p9 = pmov %p2558_p8 }
  0x71   : > { %p2560_p2 = pmov %p2558_p8 }
  0x72   : > { %2036 = vsyncadd (%p2559_p9), [#allocation6], 4294964224 }
  0x73   : > { %2038 = dma.done.wait (%p2560_p2), [#allocation9], 4096   ;;  %p2561_p3 = pmov %p2560_p2 }
  0x74   : > { %v587_v0 = vld [vmem:[#allocation8 + $0x78] sm:$0xff]  ;;  %v586_v1 = vld [vmem:[#allocation8 + $0x70] sm:$0xff]  ;;  %v585_v2 = vld [vmem:[#allocation8 + $0x68] sm:$0xff]  ;;  %vm941_vm0 = vcmask 523264   ;;  %s2411_s21 = scalar_lea.vmem [#allocation11], %s2287_s4  ;;  %s1391_s25 = sshll.u32 %s2147_s13, 10 }
  0x75   : > { %2040 = vsyncadd (%p2561_p3), [#allocation9], 4294963200  ;;  %1541 = vmatprep.subr.mxu1 %v587_v0  ;;  %v584_v3 = vld [vmem:[#allocation8 + $0x60] sm:$0xff]  ;;  %v583_v6 = vld [vmem:[#allocation8 + $0x58] sm:$0xff]  ;;  %s2443_s29 = scalar_lea.hbm %s2534_s8, %s1391_s25  ;;  %s1194_s27 = sshll.u32 %s2411_s21, 4  ;;  %s2446_s27 = int_to_ptr.vmem [resolvable:$true] %s1194_s27 }
  0x76   : > { %1542 = vmatpush3.msra.mxu1 %v587_v0  ;;  %v420_v4 = vld [vmem:[%s2291_s22] sm:$0xff]  ;;  %v582_v8 = vld [vmem:[#allocation8 + $0x50] sm:$0xff]  ;;  %v459_v9 = vld [vmem:[#allocation7 + $0x78] sm:$0xff]  ;;  %s1961_s15 = scalar_lea.vmem %s2446_s27, 1024  ;;  %p2562_p12 = scmp.ne.s32.totalorder %s2552_s19, 0 }
  0x77   : > { %1543 = vmatprep.subr.mxu1 %v586_v1  ;;  %v428_v5 = vld [vmem:[#allocation5] sm:$0xff]  ;;  %1497 = vmatprep.subr.mxu0 %v459_v9  ;;  %v458_v10 = vld [vmem:[#allocation7 + $0x70] sm:$0xff]  ;;  %v581_v11 = vld [vmem:[#allocation8 + $0x48] sm:$0xff]  ;;  %p1962_p10 = scmp.ne.s32.totalorder %s2446_s27, %s1961_s15  ;;  %s2072_s17 = smov [#allocation11]  }
  0x78   : > { %1544 = vmatpush3.msra.mxu1 %v586_v1  ;;  %v2306_v7 = vadd.f32 %v428_v5, %v420_v4  ;;  %1498 = vmatpush3.msra.mxu0 %v459_v9  ;;  %v457_v12 = vld [vmem:[#allocation7 + $0x68] sm:$0xff]  ;;  %v580_v13 = vld [vmem:[#allocation8 + $0x40] sm:$0xff]  ;;  %v579_v15 = vld [vmem:[#allocation8 + $0x38] sm:$0xff]  ;;  %s1965_s26 = sshll.u32 %s2072_s17, 4  ;;  %s1966_s26 = int_to_ptr.vmem [resolvable:$false] %s1965_s26 }
  0x79   : > { %1545 = vmatprep.subr.mxu1 %v585_v2  ;;  %1499 = vmatprep.subr.mxu0 %v458_v10  ;;  %v456_v14 = vld [vmem:[#allocation7 + $0x60] sm:$0xff]  ;;  %v455_v16 = vld [vmem:[#allocation7 + $0x58] sm:$0xff]  ;;  %v578_v17 = vld [vmem:[#allocation8 + $0x30] sm:$0xff]  ;;  %p1963_p7 = pnand %p1962_p10, %p2562_p12  ;;  %s1967_s14 = scalar_lea.vmem %s1966_s26, 2048 }
  0x7a   : > { %1546 = vmatpush3.msra.mxu1 %v585_v2  ;;  %1573 = vmatprep.mubr.f32.mxu1 %v2306_v7  ;;  %v454_v18 = vld [vmem:[#allocation7 + $0x50] sm:$0xff]  ;;  %v577_v19 = vld [vmem:[#allocation8 + $0x28] sm:$0xff]  ;;  %v576_v21 = vld [vmem:[#allocation8 + $0x20] sm:$0xff]  ;;  %p1968_p13 = scmp.lt.s32.totalorder %s2446_s27, %s1966_s26  ;;  %p1969_p0 = scmp.lt.s32.totalorder %s1967_s14, %s1961_s15 }
  0x7b   : > { %1547 = vmatprep.subr.mxu1 %v584_v3  ;;  %1500 = vmatpush3.msra.mxu0 %v458_v10  ;;  %v453_v20 = vld [vmem:[#allocation7 + $0x48] sm:$0xff]  ;;  %v452_v22 = vld [vmem:[#allocation7 + $0x40] sm:$0xff]  ;;  %v575_v23 = vld [vmem:[#allocation8 + $0x18] sm:$0xff]  ;;  %p1964_p1 = pneg %p1963_p7 }
  0x7c   : > { %1548 = vmatpush3.msra.mxu1 %v584_v3  ;;  %1501 = vmatprep.subr.mxu0 %v457_v12  ;;  %v451_v24 = vld [vmem:[#allocation7 + $0x38] sm:$0xff]  ;;  %v574_v25 = vld [vmem:[#allocation8 + $0x10] sm:$0xff]  ;;  %v573_v27 = vld [vmem:[#allocation8 + $0x8] sm:$0xff]  ;;  %p1970_p11 = por %p1969_p0, %p1968_p13 }
  0x7d   : > { %1549 = vmatprep.subr.mxu1 %v583_v6  ;;  %1502 = vmatpush3.msra.mxu0 %v457_v12  ;;  %v450_v26 = vld [vmem:[#allocation7 + $0x30] sm:$0xff]  ;;  %v421_v28 = vld [vmem:[%s2291_s22 + $0x8] sm:$0xff]  ;;  %v572_v33 = vld [vmem:[#allocation8] sm:$0xff] }
  0x7e   : > { %1550 = vmatpush3.msra.mxu1 %v583_v6  ;;  %1503 = vmatprep.subr.mxu0 %v456_v14  ;;  %v429_v29 = vld [vmem:[#allocation5 + $0x8] sm:$0xff]  ;;  %v422_v31 = vld [vmem:[%s2291_s22 + $0x10] sm:$0xff]  ;;  %v448_v34 = vld [vmem:[#allocation7 + $0x20] sm:$0xff]  ;;  %p1971_p5 = pnand %p1970_p11, %p1964_p1 }
  0x7f   : > { %1551 = vmatprep.subr.mxu1 %v582_v8  ;;  %1504 = vmatpush3.msra.mxu0 %v456_v14  ;;  %v449_v30 = vld [vmem:[#allocation7 + $0x28] sm:$0xff]  ;;  %v430_v32 = vld [vmem:[#allocation5 + $0x10] sm:$0xff]  ;;  %v2311_v35 = vadd.f32 %v429_v29, %v421_v28  ;;  %v423_v37 = vld [vmem:[%s2291_s22 + $0x18] sm:$0xff] }
  0x80   : > { %1552 = vmatpush3.msra.mxu1 %v582_v8  ;;  %1505 = vmatprep.subr.mxu0 %v455_v16  ;;  %v2313_v36 = vadd.f32 %v430_v32, %v422_v31  ;;  %v431_v38 = vld [vmem:[#allocation5 + $0x18] sm:$0xff]  ;;  %v424_v40 = vld [vmem:[%s2291_s22 + $0x20] sm:$0xff]  ;;  %v446_v42 = vld [vmem:[#allocation7 + $0x10] sm:$0xff] }
  0x81   : > { %1553 = vmatprep.subr.mxu1 %v581_v11  ;;  %1506 = vmatpush3.msra.mxu0 %v455_v16  ;;  %v447_v39 = vld [vmem:[#allocation7 + $0x18] sm:$0xff]  ;;  %v432_v41 = vld [vmem:[#allocation5 + $0x20] sm:$0xff]  ;;  %v2318_v43 = vadd.f32 %v431_v38, %v423_v37  ;;  %v425_v45 = vld [vmem:[%s2291_s22 + $0x28] sm:$0xff] }
  0x82   : > { %1554 = vmatpush3.msra.mxu1 %v581_v11  ;;  %1507 = vmatprep.subr.mxu0 %v454_v18  ;;  %v2321_v44 = vadd.f32 %v432_v41, %v424_v40  ;;  %v433_v46 = vld [vmem:[#allocation5 + $0x28] sm:$0xff]  ;;  %v426_v48 = vld [vmem:[%s2291_s22 + $0x30] sm:$0xff]  ;;  %v444_v50 = vld [vmem:[#allocation7] sm:$0xff] }
  0x83   : > { %1555 = vmatprep.subr.mxu1 %v580_v13  ;;  %1508 = vmatpush3.msra.mxu0 %v454_v18  ;;  %v445_v47 = vld [vmem:[#allocation7 + $0x8] sm:$0xff]  ;;  %v434_v49 = vld [vmem:[#allocation5 + $0x30] sm:$0xff]  ;;  %v2327_v51 = vadd.f32 %v433_v46, %v425_v45  ;;  %v427_v53 = vld [vmem:[%s2291_s22 + $0x38] sm:$0xff]  ;;  %s1176_s22 = scalar_lea.sflag [#allocation4], %s2284_s2 }
  0x84   : > { %1556 = vmatpush3.msra.mxu1 %v580_v13  ;;  %1509 = vmatprep.subr.mxu0 %v453_v20  ;;  %v2330_v52 = vadd.f32 %v434_v49, %v426_v48  ;;  %v435_v54 = vld [vmem:[#allocation5 + $0x38] sm:$0xff]  ;;  %v1371_v62 = vld [vmem:[%s2529_s3] ss:$0 sm:$0xff]  ;;  %v713_v28 = vld [vmem:[#allocation10 + $0x68] sm:$0xff] }
  0x85   : > { %1557 = vmatprep.subr.mxu1 %v579_v15  ;;  %1510 = vmatpush3.msra.mxu0 %v453_v20  ;;  %v2334_v55 = vadd.f32 %v435_v54, %v427_v53  ;;  %v1372_v2 = vld [vmem:[%s2531_s5] ss:$0 sm:$0xff]  ;;  %v710_v31 = vld [vmem:[#allocation10 + $0x50] sm:$0xff]  ;;  %v709_v32 = vld [vmem:[#allocation10 + $0x48] sm:$0xff] }
  0x86   : > { %1558 = vmatpush3.msra.mxu1 %v579_v15  ;;  %1511 = vmatprep.subr.mxu0 %v452_v22  ;;  %v712_v29 = vld [vmem:[#allocation10 + $0x60] sm:$0xff]  ;;  %v706_v37 = vld [vmem:[#allocation10 + $0x30] sm:$0xff]  ;;  %v705_v38 = vld [vmem:[#allocation10 + $0x28] sm:$0xff] }
  0x87   : > { %1559 = vmatprep.subr.mxu1 %v578_v17  ;;  %1512 = vmatpush3.msra.mxu0 %v452_v22  ;;  %v703_v40 = vld [vmem:[#allocation10 + $0x18] sm:$0xff]  ;;  %v702_v41 = vld [vmem:[#allocation10 + $0x10] sm:$0xff]  ;;  %v700_v45 = vld [vmem:[#allocation10] sm:$0xff] }
  0x88   : > { %1560 = vmatpush3.msra.mxu1 %v578_v17  ;;  %1513 = vmatprep.subr.mxu0 %v451_v24 }
  0x89   : > { %1561 = vmatprep.subr.mxu1 %v577_v19  ;;  %1514 = vmatpush3.msra.mxu0 %v451_v24 }
  0x8a   : > { %1562 = vmatpush3.msra.mxu1 %v577_v19  ;;  %1515 = vmatprep.subr.mxu0 %v450_v26 }
  0x8b   : > { %1563 = vmatprep.subr.mxu1 %v576_v21  ;;  %1516 = vmatpush3.msra.mxu0 %v450_v26  ;;  %v715_v26 = vld [vmem:[#allocation10 + $0x78] sm:$0xff] }
  0x8c   : > { %1564 = vmatpush3.msra.mxu1 %v576_v21  ;;  %1517 = vmatprep.subr.mxu0 %v449_v30 }
  0x8d   : > { %1565 = vmatprep.subr.mxu1 %v575_v23  ;;  %1518 = vmatpush3.msra.mxu0 %v449_v30  ;;  %v711_v30 = vld [vmem:[#allocation10 + $0x58] sm:$0xff] }
  0x8e   : > { %1566 = vmatpush3.msra.mxu1 %v575_v23  ;;  %1519 = vmatprep.subr.mxu0 %v448_v34 }
  0x8f   : > { %1567 = vmatprep.subr.mxu1 %v574_v25  ;;  %1520 = vmatpush3.msra.mxu0 %v448_v34  ;;  %v707_v34 = vld [vmem:[#allocation10 + $0x38] sm:$0xff] }
  0x90   : > { %1568 = vmatpush3.msra.mxu1 %v574_v25  ;;  %1521 = vmatprep.subr.mxu0 %v447_v39 }
  0x91   : > { %1569 = vmatprep.subr.mxu1 %v573_v27  ;;  %1522 = vmatpush3.msra.mxu0 %v447_v39  ;;  %v704_v39 = vld [vmem:[#allocation10 + $0x20] sm:$0xff] }
  0x92   : > { %1570 = vmatpush3.msra.mxu1 %v573_v27  ;;  %1523 = vmatprep.subr.mxu0 %v446_v42  ;;  %v714_v27 = vld [vmem:[#allocation10 + $0x70] sm:$0xff] }
  0x93   : > { %1571 = vmatprep.subr.mxu1 %v572_v33  ;;  %1529 = vmatprep.mubr.f32.mxu0 %v2306_v7 }
  0x94   : > { %1572 = vmatpush3.msra.mxu1 %v572_v33  ;;  %1524 = vmatpush3.msra.mxu0 %v446_v42  ;;  %v708_v33 = vld [vmem:[#allocation10 + $0x40] sm:$0xff]  ;;  %v701_v42 = vld [vmem:[#allocation10 + $0x8] sm:$0xff] }
  0x95   : > { %1574 = vmatmul.mubr.f32.vlgmr.msra.gmra.mxu1 %v2311_v35  ;;  %1525 = vmatprep.subr.mxu0 %v445_v47 }
  0x96   : > { %1576 = vmatprep.mubr.f32.mxu1 %v2313_v36  ;;  %1526 = vmatpush3.msra.mxu0 %v445_v47 }
  0x97   : > { %1527 = vmatprep.subr.mxu0 %v444_v50 }
  0x98   : > { %1528 = vmatpush3.msra.mxu0 %v444_v50 }
  0x99   : > { %1577 = vmatmul.mubr.f32.gmra.mxu1 %v2318_v43  ;;  %1530 = vmatmul.mubr.f32.vlgmr.msra.gmra.mxu0 %v2311_v35 }
  0x9a   : > { %1579 = vmatprep.mubr.f32.mxu1 %v2321_v44  ;;  %1532 = vmatprep.mubr.f32.mxu0 %v2313_v36 }
  0x9b   : > { %1585 = vmatprep.subr.mxu0 %v715_v26 }
  0x9c   : > { %1586 = vmatpush3.msra.mxu0 %v715_v26 }
  0x9d   : > { %1580 = vmatmul.mubr.f32.gmra.mxu1 %v2327_v51  ;;  %1533 = vmatmul.mubr.f32.gmra.mxu0 %v2318_v43 }
  0x9e   : > { %1582 = vmatprep.mubr.f32.mxu1 %v2330_v52  ;;  %1535 = vmatprep.mubr.f32.mxu0 %v2321_v44 }
  0x9f   : > { %1587 = vmatprep.subr.mxu0 %v714_v27 }
  0xa0   : > { %1588 = vmatpush3.msra.mxu0 %v714_v27 }
  0xa1   : > { %1583 = vmatmul.mubr.f32.gmra.mxu1 %v2334_v55  ;;  %1536 = vmatmul.mubr.f32.gmra.mxu0 %v2327_v51 }
  0xa2   : > { %1538 = vmatprep.mubr.f32.mxu0 %v2330_v52  ;;  %1589 = vmatprep.subr.mxu0 %v713_v28 }
  0xa3   : > { %1590 = vmatpush3.msra.mxu0 %v713_v28 }
  0xa4   : > { %1591 = vmatprep.subr.mxu0 %v712_v29 }
  0xa5   : > { %1539 = vmatmul.mubr.f32.gmra.mxu0 %v2334_v55 }
  0xa6   : > { %1617 = vmatprep.mubr.f32.mxu0 %v2306_v7  ;;  %1592 = vmatpush3.msra.mxu0 %v712_v29 }
  0xa7   : > { %1593 = vmatprep.subr.mxu0 %v711_v30 }
  0xa8   : > { %1594 = vmatpush3.msra.mxu0 %v711_v30 }
  0xa9   : > { %1595 = vmatprep.subr.mxu0 %v710_v31 }
  0xaa   : > { %1596 = vmatpush3.msra.mxu0 %v710_v31 }
  0xab   : > { %1597 = vmatprep.subr.mxu0 %v709_v32 }
  0xac   : > { %1598 = vmatpush3.msra.mxu0 %v709_v32 }
  0xad   : > { %1599 = vmatprep.subr.mxu0 %v708_v33 }
  0xae   : > { %1600 = vmatpush3.msra.mxu0 %v708_v33 }
  0xaf   : > { %1601 = vmatprep.subr.mxu0 %v707_v34 }
  0xb0   : > { %1602 = vmatpush3.msra.mxu0 %v707_v34 }
  0xb1   : > { %1603 = vmatprep.subr.mxu0 %v706_v37 }
  0xb2   : > { %1604 = vmatpush3.msra.mxu0 %v706_v37 }
  0xb3   : > { %1605 = vmatprep.subr.mxu0 %v705_v38 }
  0xb4   : > { %1606 = vmatpush3.msra.mxu0 %v705_v38 }
  0xb5   : > { %1607 = vmatprep.subr.mxu0 %v704_v39 }
  0xb6   : > { %1608 = vmatpush3.msra.mxu0 %v704_v39 }
  0xb7   : > { %1609 = vmatprep.subr.mxu0 %v703_v40 }
  0xb8   : > { %1610 = vmatpush3.msra.mxu0 %v703_v40 }
  0xb9   : > { %1611 = vmatprep.subr.mxu0 %v702_v41 }
  0xba   : > { %1612 = vmatpush3.msra.mxu0 %v702_v41 }
  0xbb   : > { %1613 = vmatprep.subr.mxu0 %v701_v42 }
  0xbc   : > { %1614 = vmatpush3.msra.mxu0 %v701_v42 }
  0xbd   : > { %1615 = vmatprep.subr.mxu0 %v700_v45 }
  0xbe   : > { %1616 = vmatpush3.msra.mxu0 %v700_v45 }
  0xbf   : > { %1618 = vmatmul.mubr.f32.vlgmr.msra.gmra.mxu0 %v2311_v35 }
  0xc0   : > { %1620 = vmatprep.mubr.f32.mxu0 %v2313_v36 }
  0xc3   : > { %1621 = vmatmul.mubr.f32.gmra.mxu0 %v2318_v43 }
  0xc4   : > { %1623 = vmatprep.mubr.f32.mxu0 %v2321_v44 }
  0xc7   : > { %1624 = vmatmul.mubr.f32.gmra.mxu0 %v2327_v51 }
  0xc8   : > { %1626 = vmatprep.mubr.f32.mxu0 %v2330_v52 }
  0xcb   : > { %1627 = vmatmul.mubr.f32.gmra.mxu0 %v2334_v55 }
 0x155   : > { %v1575_v56 = vpop.f32.mrf.mxu1 }
 0x156   : > { %v667_v12 = vadd.f32 %v1575_v56, %v1372_v2 }
 0x157   : > { %v661_v57 = vpop.f32.mrf.mxu1 }
 0x158   : > { %v662_v14 = vadd.f32 %v1372_v2, %v661_v57 }
 0x159   : > { %v1578_v58 = vpop.f32.mrf.mxu1  ;;  %v1531_v61 = vpop.f32.mrf.mxu0 }
 0x15a   : > { %v677_v9 = vadd.f32 %v1578_v58, %v1372_v2  ;;  %v539_v18 = vadd.f32 %v1531_v61, %v1371_v62 }
 0x15b   : > { %v671_v59 = vpop.f32.mrf.mxu1  ;;  %v533_v0 = vpop.f32.mrf.mxu0 }
 0x15c   : > { %v534_v1 = vadd.f32 %v1371_v62, %v533_v0  ;;  %v672_v10 = vadd.f32 %v1372_v2, %v671_v59 }
 0x15d   : > { %v1581_v60 = vpop.f32.mrf.mxu1  ;;  %v1534_v11 = vpop.f32.mrf.mxu0 }
 0x15e   : > { %1645 = vmatprep.mubr.f32.mxu1 %v534_v1  ;;  %v687_v7 = vadd.f32 %v1581_v60, %v1372_v2  ;;  %v549_v21 = vadd.f32 %v1534_v11, %v1371_v62 }
 0x15f   : > { %v681_v63 = vpop.f32.mrf.mxu1  ;;  %v543_v13 = vpop.f32.mrf.mxu0 }
 0x160   : > { %v682_v8 = vadd.f32 %v1372_v2, %v681_v63  ;;  %v544_v17 = vadd.f32 %v1371_v62, %v543_v13 }
 0x161   : > { %v1584_v3 = vpop.f32.mrf.mxu1  ;;  %v1537_v15 = vpop.f32.mrf.mxu0 }
 0x162   : > { %v697_v4 = vadd.f32 %v1584_v3, %v1372_v2  ;;  %v559_v24 = vadd.f32 %v1537_v15, %v1371_v62 }
 0x163   : > { %v691_v5 = vpop.f32.mrf.mxu1  ;;  %v553_v16 = vpop.f32.mrf.mxu0 }
 0x164   : > { %v692_v6 = vadd.f32 %v1372_v2, %v691_v5  ;;  %1629 = vmatprep.subr.mxu1 %v697_v4  ;;  %v554_v20 = vadd.f32 %v1371_v62, %v553_v16 }
 0x165   : > { %1630 = vmatpush3.xpose.msra.mxu1 %v697_v4  ;;  %v1540_v19 = vpop.f32.mrf.mxu0 }
 0x166   : > { %1631 = vmatprep.subr.mxu1 %v692_v6  ;;  %v569_v25 = vadd.f32 %v1540_v19, %v1371_v62 }
 0x167   : > { %v563_v22 = vpop.f32.mrf.mxu0 }
 0x168   : > { %v564_v23 = vadd.f32 %v1371_v62, %v563_v22 }
 0x169   : > { %1632 = vmatpush3.xpose.msra.mxu1 %v692_v6 }
 0x16a   : > { %1633 = vmatprep.subr.mxu1 %v687_v7 }
 0x16d   : > { %1634 = vmatpush3.xpose.msra.mxu1 %v687_v7  ;;  %v1373_v7 = vld [vmem:[%s2533_s7] ss:$0 sm:$0xff] }
 0x16e   : > { %1635 = vmatprep.subr.mxu1 %v682_v8 }
 0x171   : > { %1636 = vmatpush3.xpose.msra.mxu1 %v682_v8 }
 0x172   : > { %1637 = vmatprep.subr.mxu1 %v677_v9 }
 0x175   : > { %1638 = vmatpush3.xpose.msra.mxu1 %v677_v9 }
 0x176   : > { %1639 = vmatprep.subr.mxu1 %v672_v10 }
 0x179   : > { %1640 = vmatpush3.xpose.msra.mxu1 %v672_v10 }
 0x17a   : > { %1641 = vmatprep.subr.mxu1 %v667_v12 }
 0x17d   : > { %1642 = vmatpush3.xpose.msra.mxu1 %v667_v12 }
 0x17e   : > { %1643 = vmatprep.subr.mxu1 %v662_v14 }
 0x17f   : > { %v1619_v2 = vpop.f32.mrf.mxu0 }
 0x180   : > { %v795_v19 = vadd.f32 %v1619_v2, %v1373_v7 }
 0x181   : > { %1644 = vmatpush3.xpose.msra.mxu1 %v662_v14  ;;  %v789_v3 = vpop.f32.mrf.mxu0 }
 0x183   : > { %v1622_v4 = vpop.f32.mrf.mxu0 }
 0x184   : > { %1646 = vmatmul.mubr.f32.vlgmr.msra.gmra.mxu1 %v539_v18  ;;  %v805_v15 = vadd.f32 %v1622_v4, %v1373_v7 }
 0x185   : > { %1648 = vmatprep.mubr.f32.mxu1 %v544_v17  ;;  %v799_v5 = vpop.f32.mrf.mxu0 }
 0x186   : > { %v800_v16 = vadd.f32 %v1373_v7, %v799_v5 }
 0x187   : > { %v1625_v6 = vpop.f32.mrf.mxu0 }
 0x188   : > { %1649 = vmatmul.mubr.f32.gmra.mxu1 %v549_v21  ;;  %v815_v12 = vadd.f32 %v1625_v6, %v1373_v7 }
 0x189   : > { %1651 = vmatprep.mubr.f32.mxu1 %v554_v20  ;;  %v809_v8 = vpop.f32.mrf.mxu0 }
 0x18a   : > { %v810_v14 = vadd.f32 %v1373_v7, %v809_v8 }
 0x18b   : > { %v1628_v9 = vpop.f32.mrf.mxu0 }
 0x18c   : > { %1652 = vmatmul.mubr.f32.gmra.mxu1 %v559_v24  ;;  %v825_v10 = vadd.f32 %v1628_v9, %v1373_v7 }
 0x18d   : > { %1654 = vmatprep.mubr.f32.mxu1 %v564_v23  ;;  %v819_v11 = vpop.f32.mrf.mxu0  ;;  %v790_v23 = vadd.f32 %v1373_v7, %v789_v3 }
 0x18e   : > { %v820_v13 = vadd.f32 %v1373_v7, %v819_v11  ;;  %1657 = vmatprep.subr.mxu0 %v825_v10  ;;  %1685 = vmatprep.subr.mxu1 %v825_v10 }
 0x18f   : > { %1658 = vmatpush3.msra.mxu0 %v825_v10  ;;  %1693 = vmatpush3.msra.mxu1 %v825_v10 }
 0x190   : > { %1655 = vmatmul.mubr.f32.gmra.mxu1 %v569_v25  ;;  %1659 = vmatprep.subr.mxu0 %v820_v13 }
 0x191   : > { %1686 = vmatprep.subr.mxu1 %v820_v13  ;;  %1660 = vmatpush3.msra.mxu0 %v820_v13 }
 0x192   : > { %1694 = vmatpush3.msra.mxu1 %v820_v13  ;;  %1661 = vmatprep.subr.mxu0 %v815_v12 }
 0x193   : > { %1687 = vmatprep.subr.mxu1 %v815_v12  ;;  %1662 = vmatpush3.msra.mxu0 %v815_v12 }
 0x194   : > { %1695 = vmatpush3.msra.mxu1 %v815_v12  ;;  %1663 = vmatprep.subr.mxu0 %v810_v14 }
 0x195   : > { %1688 = vmatprep.subr.mxu1 %v810_v14  ;;  %1664 = vmatpush3.msra.mxu0 %v810_v14 }
 0x196   : > { %1696 = vmatpush3.msra.mxu1 %v810_v14  ;;  %1665 = vmatprep.subr.mxu0 %v805_v15 }
 0x197   : > { %1689 = vmatprep.subr.mxu1 %v805_v15  ;;  %1666 = vmatpush3.msra.mxu0 %v805_v15 }
 0x198   : > { %1697 = vmatpush3.msra.mxu1 %v805_v15  ;;  %1667 = vmatprep.subr.mxu0 %v800_v16 }
 0x199   : > { %1690 = vmatprep.subr.mxu1 %v800_v16  ;;  %1668 = vmatpush3.msra.mxu0 %v800_v16 }
 0x19a   : > { %1698 = vmatpush3.msra.mxu1 %v800_v16  ;;  %1669 = vmatprep.subr.mxu0 %v795_v19 }
 0x19b   : > { %1691 = vmatprep.subr.mxu1 %v795_v19  ;;  %1670 = vmatpush3.msra.mxu0 %v795_v19 }
 0x19c   : > { %1699 = vmatpush3.msra.mxu1 %v795_v19  ;;  %1671 = vmatprep.subr.mxu0 %v790_v23 }
 0x19d   : > { %1692 = vmatprep.subr.mxu1 %v790_v23  ;;  %1672 = vmatpush3.msra.mxu0 %v790_v23 }
 0x19e   : > { %1700 = vmatpush3.msra.mxu1 %v790_v23 }
 0x244   : > { %v1647_v46 = vpop.f32.mrf.mxu1 }
 0x245   : > { %v2359_v47 = vmul.f32 0.088388346, %v1647_v46 }
 0x246   : > { %v894_v48 = vpop.f32.mrf.mxu1 }
 0x247   : > { %v2361_v49 = vmul.f32 0.088388346, %v894_v48  ;;  %v945_v35 = vsel %vm941_vm0, %v2359_v47, -inf }
 0x248   : > { %946 = vmax.xlane.f32.xlu1 %v945_v35  ;;  %v1650_v36 = vpop.f32.mrf.mxu1 }
 0x249   : > { %v942_v43 = vsel %vm941_vm0, %v2361_v49, -inf  ;;  %v2379_v60 = vmul.f32 0.088388346, %v1650_v36 }
 0x24a   : > { %943 = vmax.xlane.f32.xlu0 %v942_v43  ;;  %v904_v44 = vpop.f32.mrf.mxu1 }
 0x24b   : > { %v2373_v56 = vmul.f32 0.088388346, %v904_v44  ;;  %v951_v0 = vsel %vm941_vm0, %v2379_v60, -inf }
 0x24c   : > { %v1653_v50 = vpop.f32.mrf.mxu1 }
 0x24d   : > { %v2367_v51 = vmul.f32 0.088388346, %v1653_v50  ;;  %v948_v62 = vsel %vm941_vm0, %v2373_v56, -inf }
 0x24e   : > { %v914_v52 = vpop.f32.mrf.mxu1 }
 0x24f   : > { %v2369_v53 = vmul.f32 0.088388346, %v914_v52  ;;  %v957_v54 = vsel %vm941_vm0, %v2367_v51, -inf }
 0x250   : > { %958 = vmax.xlane.f32.xlu1 %v957_v54  ;;  %v1656_v55 = vpop.f32.mrf.mxu1 }
 0x251   : > { %v954_v57 = vsel %vm941_vm0, %v2369_v53, -inf  ;;  %v2381_v61 = vmul.f32 0.088388346, %v1656_v55 }
 0x252   : > { %955 = vmax.xlane.f32.xlu0 %v954_v57  ;;  %v924_v58 = vpop.f32.mrf.mxu1 }
 0x253   : > { %v2377_v59 = vmul.f32 0.088388346, %v924_v58  ;;  %v963_v1 = vsel %vm941_vm0, %v2381_v61, -inf }
 0x255   : > { %v960_v63 = vsel %vm941_vm0, %v2377_v59, -inf }
 0x256   : > { %949 = vmax.xlane.f32.xlu0 %v948_v62  ;;  %961 = vmax.xlane.f32.xlu1 %v960_v63 }
 0x25a   : > { %952 = vmax.xlane.f32.xlu0 %v951_v0  ;;  %964 = vmax.xlane.f32.xlu1 %v963_v1 }
 0x2d1   : > { %v947_v17 = vpop.xlane.xlu1 %946 }
 0x2d2   : > { %v967_v18 = vsub.f32 %v2359_v47, %v947_v17 }
 0x2d3   : > { %v944_v20 = vpop.xlane.xlu0 %943 }
 0x2d4   : > { %v976_v21 = vmul.f32 1.442695, %v967_v18  ;;  %v966_v22 = vsub.f32 %v2361_v49, %v944_v20 }
 0x2d6   : > { %1797 = vpow2.f32 %v976_v21  ;;  %v974_v24 = vmul.f32 1.442695, %v966_v22 }
 0x2d8   : > { %1799 = vpow2.f32 %v974_v24 }
 0x2d9   : > { %v959_v25 = vpop.xlane.xlu1 %958 }
 0x2da   : > { %v971_v26 = vsub.f32 %v2367_v51, %v959_v25 }
 0x2db   : > { %v956_v27 = vpop.xlane.xlu0 %955 }
 0x2dc   : > { %v984_v28 = vmul.f32 1.442695, %v971_v26  ;;  %v970_v29 = vsub.f32 %v2369_v53, %v956_v27 }
 0x2de   : > { %1801 = vpow2.f32 %v984_v28  ;;  %v982_v30 = vmul.f32 1.442695, %v970_v29 }
 0x2df   : > { %v950_v31 = vpop.xlane.xlu0 %949  ;;  %v962_v32 = vpop.xlane.xlu1 %961 }
 0x2e0   : > { %1803 = vpow2.f32 %v982_v30  ;;  %v968_v33 = vsub.f32 %v2373_v56, %v950_v31  ;;  %v972_v34 = vsub.f32 %v2377_v59, %v962_v32 }
 0x2e2   : > { %v978_v37 = vmul.f32 1.442695, %v968_v33  ;;  %v986_v38 = vmul.f32 1.442695, %v972_v34 }
 0x2e3   : > { %v1798_v39 = vpop.eup %1797  ;;  %v953_v40 = vpop.xlane.xlu0 %952 }
 0x2e4   : > { %v965_v41 = vpop.xlane.xlu1 %964  ;;  %1805 = vpow2.f32 %v978_v37  ;;  %v969_v42 = vsub.f32 %v2379_v60, %v953_v40  ;;  %v993_v46 = vsel %vm941_vm0, %v1798_v39, 0.0 }
 0x2e5   : > { %v973_v45 = vsub.f32 %v2381_v61, %v965_v41  ;;  %v1800_v47 = vpop.eup %1799  ;;  %1807 = vpow2.f32 %v986_v38  ;;  %994 = vadd.xlane.f32.xlu0 %v993_v46 }
 0x2e6   : > { %v980_v48 = vmul.f32 1.442695, %v969_v42  ;;  %v990_v35 = vsel %vm941_vm0, %v1800_v47, 0.0 }
 0x2e7   : > { %v988_v49 = vmul.f32 1.442695, %v973_v45 }
 0x2e8   : > { %1809 = vpow2.f32 %v980_v48 }
 0x2e9   : > { %1811 = vpow2.f32 %v988_v49  ;;  %991 = vadd.xlane.f32.xlu0 %v990_v35 }
 0x2eb   : > { %v1802_v36 = vpop.eup %1801 }
 0x2ec   : > { %v1005_v43 = vsel %vm941_vm0, %v1802_v36, 0.0 }
 0x2ed   : > { %v1804_v44 = vpop.eup %1803  ;;  %1006 = vadd.xlane.f32.xlu1 %v1005_v43 }
 0x2ee   : > { %v1002_v50 = vsel %vm941_vm0, %v1804_v44, 0.0 }
 0x2f1   : > { %v1806_v51 = vpop.eup %1805  ;;  %1003 = vadd.xlane.f32.xlu1 %v1002_v50 }
 0x2f2   : > { %v1808_v52 = vpop.eup %1807  ;;  %v996_v53 = vsel %vm941_vm0, %v1806_v51, 0.0 }
 0x2f3   : > { %997 = vadd.xlane.f32.xlu0 %v996_v53  ;;  %v1008_v54 = vsel %vm941_vm0, %v1808_v52, 0.0 }
 0x2f5   : > { %v1810_v55 = vpop.eup %1809  ;;  %1009 = vadd.xlane.f32.xlu1 %v1008_v54 }
 0x2f6   : > { %v1812_v56 = vpop.eup %1811  ;;  %v999_v57 = vsel %vm941_vm0, %v1810_v55, 0.0 }
 0x2f7   : > { %1000 = vadd.xlane.f32.xlu0 %v999_v57  ;;  %v1011_v58 = vsel %vm941_vm0, %v1812_v56, 0.0 }
 0x2f9   : > { %1012 = vadd.xlane.f32.xlu1 %v1011_v58 }
 0x36e   : > { %v995_v59 = vpop.xlane.xlu0 %994 }
 0x36f   : > { %1813 = vrcp.f32 %v995_v59 }
 0x372   : > { %v992_v60 = vpop.xlane.xlu0 %991 }
 0x373   : > { %1815 = vrcp.f32 %v992_v60 }
 0x376   : > { %v1007_v61 = vpop.xlane.xlu1 %1006 }
 0x377   : > { %1817 = vrcp.f32 %v1007_v61 }
 0x37a   : > { %v1004_v62 = vpop.xlane.xlu1 %1003 }
 0x37b   : > { %1819 = vrcp.f32 %v1004_v62 }
 0x37c   : > { %v1814_v63 = vpop.eup %1813  ;;  %v998_v0 = vpop.xlane.xlu0 %997 }
 0x37d   : > { %v1017_v1 = vmul.f32 %v1814_v63, %v1798_v39  ;;  %1821 = vrcp.f32 %v998_v0 }
 0x37e   : > { %v1010_v2 = vpop.xlane.xlu1 %1009 }
 0x37f   : > { %1031 = vst.msk [vmem:[%s2411_s21 + $0x8] sm:$0xff] %vm941_vm0, %v1017_v1  ;;  %1823 = vrcp.f32 %v1010_v2 }
 0x380   : > { %v1816_v3 = vpop.eup %1815  ;;  %v1001_v4 = vpop.xlane.xlu0 %1000 }
 0x381   : > { %1825 = vrcp.f32 %v1001_v4  ;;  %v1015_v5 = vmul.f32 %v1816_v3, %v1800_v47 }
 0x382   : > { %v1013_v6 = vpop.xlane.xlu1 %1012 }
 0x383   : > { %1827 = vrcp.f32 %v1013_v6  ;;  %1030 = vst.msk [vmem:[%s2411_s21] sm:$0xff] %vm941_vm0, %v1015_v5  ;;  %1673 = vmatprep.mubr.msk.f32.mxu0 %vm941_vm0, %v1015_v5 }
 0x384   : > { %v1818_v7 = vpop.eup %1817  ;;  %1674 = vmatmul.mubr.msk.f32.vlgmr.msra.gmra.mxu0 %vm941_vm0, %v1017_v1 }
 0x385   : > { %v1025_v8 = vmul.f32 %v1818_v7, %v1802_v36 }
 0x387   : > { %1035 = vst.msk [vmem:[%s2411_s21 + $0x28] sm:$0xff] %vm941_vm0, %v1025_v8 }
 0x388   : > { %v1820_v9 = vpop.eup %1819 }
 0x389   : > { %v1023_v10 = vmul.f32 %v1820_v9, %v1804_v44 }
 0x38a   : > { %v1822_v11 = vpop.eup %1821 }
 0x38b   : > { %1034 = vst.msk [vmem:[%s2411_s21 + $0x20] sm:$0xff] %vm941_vm0, %v1023_v10  ;;  %1679 = vmatprep.mubr.msk.f32.mxu1 %vm941_vm0, %v1023_v10  ;;  %v1019_v12 = vmul.f32 %v1822_v11, %v1806_v51 }
 0x38c   : > { %v1824_v13 = vpop.eup %1823  ;;  %1680 = vmatmul.mubr.msk.f32.vlgmr.msra.gmra.mxu1 %vm941_vm0, %v1025_v8 }
 0x38d   : > { %1032 = vst.msk [vmem:[%s2411_s21 + $0x10] sm:$0xff] %vm941_vm0, %v1019_v12  ;;  %1676 = vmatprep.mubr.msk.f32.mxu0 %vm941_vm0, %v1019_v12  ;;  %v1027_v14 = vmul.f32 %v1824_v13, %v1808_v52 }
 0x38e   : > { %v1826_v15 = vpop.eup %1825 }
 0x38f   : > { %1036 = vst.msk [vmem:[%s2411_s21 + $0x30] sm:$0xff] %vm941_vm0, %v1027_v14  ;;  %1682 = vmatprep.mubr.msk.f32.mxu1 %vm941_vm0, %v1027_v14  ;;  %v1021_v16 = vmul.f32 %v1826_v15, %v1810_v55 }
 0x390   : > { %v1828_v17 = vpop.eup %1827 }
 0x391   : > { %1033 = vst.msk [vmem:[%s2411_s21 + $0x18] sm:$0xff] %vm941_vm0, %v1021_v16  ;;  %1677 = vmatmul.mubr.msk.f32.gmra.mxu0 %vm941_vm0, %v1021_v16  ;;  %v1029_v18 = vmul.f32 %v1828_v17, %v1812_v56 }
 0x393   : > { %1037 = vst.msk [vmem:[%s2411_s21 + $0x38] sm:$0xff] %vm941_vm0, %v1029_v18  ;;  %1683 = vmatmul.mubr.msk.f32.gmra.mxu1 %vm941_vm0, %v1029_v18 }
 0x394   : > { %1974 = shalt.err (!%p1971_p5)
}
 0x395   : > { %s1975_s20 = scalar_lea.hbm %s2443_s29, 1024  ;;  %s1979_s28 = scalar_lea.hbm %s2534_s8, 2048 }
 0x396   : > { %p1976_p6 = scmp.ne.s32.totalorder %s2443_s29, %s1975_s20  ;;  %p1980_p9 = scmp.lt.s32.totalorder %s2443_s29, %s2534_s8 }
 0x397   : > { %p1981_p2 = scmp.lt.s32.totalorder %s1979_s28, %s1975_s20 }
 0x398   : > { %p1977_p4 = pnand %p1976_p6, %p2562_p12 }
 0x399   : > { %p1982_p3 = por %p1981_p2, %p1980_p9 }
 0x39a   : > { %p1978_p8 = pneg %p1977_p4 }
 0x39c   : > { %p1983_p10 = pnand %p1982_p3, %p1978_p8 }
 0x39e   : > { %1986 = shalt.err (!%p1983_p10)
}
 0x39f   : > { %s2073_s15 = smov 128   ;;  %s2074_s26 = smov 8  }
 0x3a0   : > { %1719 = dma.vmem_to_hbm [thread:$0]  (%p2562_p12), %s2446_s27, 1024, %s2443_s29, %s1176_s22, %s2073_s15, %s2073_s15, %s2074_s26  }
 0x3a1   : > { %s419_s14 = scalar_lea.vmem [#allocation12], %s2287_s4  ;;  %s2482_s27 = scalar_lea.hbm %s2535_s9, %s1391_s25 }
 0x3a2   : > { %s1210_s20 = sshll.u32 %s419_s14, 4  ;;  %s1181_s22 = scalar_lea.sflag [#allocation13], %s2284_s2  ;;  %s2475_s20 = int_to_ptr.vmem [resolvable:$true] %s1210_s20 }
 0x3a3   : > { %s1987_s24 = scalar_lea.vmem %s2475_s20, 1024  ;;  %s2075_s21 = smov [#allocation12]  }
 0x3a4   : > { %p1988_p7 = scmp.ne.s32.totalorder %s2475_s20, %s1987_s24  ;;  %s1991_s28 = sshll.u32 %s2075_s21, 4  ;;  %s1992_s28 = int_to_ptr.vmem [resolvable:$false] %s1991_s28 }
 0x3a5   : > { %s1993_s1 = scalar_lea.vmem %s1992_s28, 2048  ;;  %p1994_p0 = scmp.lt.s32.totalorder %s2475_s20, %s1992_s28 }
 0x3a6   : > { %p1989_p1 = pnand %p1988_p7, %p2562_p12  ;;  %p1995_p11 = scmp.lt.s32.totalorder %s1993_s1, %s1987_s24 }
 0x3a8   : > { %p1990_p13 = pneg %p1989_p1  ;;  %p1996_p5 = por %p1995_p11, %p1994_p0 }
 0x3aa   : > { %p1997_p6 = pnand %p1996_p5, %p1990_p13 }
 0x444   : > { %v1675_v19 = vpop.f32.mrf.mxu0 }
 0x445   : > { %1168 = vst [vmem:[%s419_s14 + $0x8] sm:$0xff] %v1675_v19 }
 0x446   : > { %v1128_v20 = vpop.f32.mrf.mxu0 }
 0x447   : > { %1167 = vst [vmem:[%s419_s14] sm:$0xff] %v1128_v20 }
 0x44c   : > { %v1681_v21 = vpop.f32.mrf.mxu1 }
 0x44d   : > { %1172 = vst [vmem:[%s419_s14 + $0x28] sm:$0xff] %v1681_v21 }
 0x44e   : > { %v1148_v22 = vpop.f32.mrf.mxu1 }
 0x44f   : > { %1171 = vst [vmem:[%s419_s14 + $0x20] sm:$0xff] %v1148_v22 }
 0x451   : > { %v1678_v23 = vpop.f32.mrf.mxu0 }
 0x452   : > { %1170 = vst [vmem:[%s419_s14 + $0x18] sm:$0xff] %v1678_v23 }
 0x453   : > { %v1138_v24 = vpop.f32.mrf.mxu0  ;;  %v1684_v25 = vpop.f32.mrf.mxu1 }
 0x454   : > { %1169 = vst [vmem:[%s419_s14 + $0x10] sm:$0xff] %v1138_v24  ;;  %1174 = vst [vmem:[%s419_s14 + $0x38] sm:$0xff] %v1684_v25 }
 0x455   : > { %v1158_v26 = vpop.f32.mrf.mxu1 }
 0x456   : > { %1173 = vst [vmem:[%s419_s14 + $0x30] sm:$0xff] %v1158_v26 }
 0x457   : > { %2000 = shalt.err (!%p1997_p6)
}
 0x458   : > { %s2001_s13 = scalar_lea.hbm %s2482_s27, 1024  ;;  %s2005_s17 = scalar_lea.hbm %s2535_s9, 2048 }
 0x459   : > { %p2002_p4 = scmp.ne.s32.totalorder %s2482_s27, %s2001_s13  ;;  %p2006_p2 = scmp.lt.s32.totalorder %s2482_s27, %s2535_s9 }
 0x45a   : > { %p2007_p3 = scmp.lt.s32.totalorder %s2005_s17, %s2001_s13 }
 0x45b   : > { %p2003_p8 = pnand %p2002_p4, %p2562_p12 }
 0x45c   : > { %p2008_p10 = por %p2007_p3, %p2006_p2 }
 0x45d   : > { %p2004_p9 = pneg %p2003_p8 }
 0x45f   : > { %p2009_p7 = pnand %p2008_p10, %p2004_p9 }
 0x461   : > { %2012 = shalt.err (!%p2009_p7)
}
 0x462   : > { %1720 = dma.vmem_to_hbm [thread:$0]  (%p2562_p12), %s2475_s20, 1024, %s2482_s27, %s1181_s22, %s2073_s15, %s2073_s15, %s2074_s26  }
 0x463 PF: > { %s1225_s29 = sand.u32 1, %s2051_s30   ;;  %p2563_p1 = scmp.ne.s32.totalorder %s2546_s16, 0 }
 0x464   : > { %p2564_p13 = scmp.ge.s32.totalorder %s2063_s12, 2  ;;  %s1226_s24 = scalar_lea.sflag [#allocation4], %s1225_s29 }
 0x466   : > { %p1741_p0 = pnand %p2564_p13, %p2563_p1 }
 0x468   : > { %p1742_p11 = pneg %p1741_p0 }
 0x46a   : > { %2042 = dma.done.wait (%p1742_p11), %s1226_s24, 1024  }
 0x46b   : > { %2044 = vsyncadd (%p1742_p11), %s1226_s24, 4294966272  ;;  %s1235_s21 = scalar_lea.sflag [#allocation13], %s1225_s29 }
 0x46c   : > { %2046 = dma.done.wait (%p1742_p11), %s1235_s21, 1024  }
 0x46d   : > { %2048 = vsyncadd (%p1742_p11), %s1235_s21, 4294966272  ;;  %p28_p12 = scmp.ge.s32.totalorder %s2226_s18, 4   ;;  %s2565_s30 = smov %s2055_s10 }
 0x46e   : > { %s2566_s10 = smov %s2059_s11  ;;  %s2567_s11 = smov %s2242_s23 }
 0x46f   : > { %s2568_s12 = smov %s2226_s18  ;;  %30 = sbr.rel (!%p28_p12) target bundleno = 13 (0xd), region = 130 }
 0x474   :  { %1240 = vsyncpa [#allocation3], 1 }
 0x475   :  { %1242 = vsyncpa [#allocation3 + $0x1], 1 }
 0x476   :  { %1243 = vsyncpa [#allocation6], 1 }
 0x477   :  { %1244 = vsyncpa [#allocation9], 1 }
 0x478   :  { %1245 = vsyncpa [#allocation4], 1 }
 0x479   :  { %1247 = vsyncpa [#allocation4 + $0x1], 1 }
 0x47a   :  { %1248 = vsyncpa [#allocation13], 1 }
 0x47b   :  { %1250 = vsyncpa [#allocation13 + $0x1], 1 }

</bundles_post_ra>
